<compile_context>
chip_gen: v6e
topology: v6e:2x2x1
jax: 0.10.0
libtpu: 0.0.40
codegen_flags: <defaults>
</compile_context>

<pallas_src>
import jax
import jax.numpy as jnp
from jax import lax
from jax.experimental import pallas as pl
from jax.experimental.pallas import tpu as pltpu

D_MODEL = 6
N_HEADS = 2
HEAD_DIM = 3
ATTN_SHARPNESS = 10.0   # the "c" of the exact construction; any c > 0 keeps the sign exact


# ----------------------------- Pallas kernel ---------------------------------
def _first_exact_kernel(ids_ref, wpk_ref, out_ref):
    """One grid step == one word.

    ids_ref : (B, L) int32, SMEM (scalar prefetch) -- token ids, CLS prepended.
    wpk_ref : (8, 32) f32, VMEM -- packed weights (constant block index, fetched once):
              [0:6, 0:18] = [Wq0|Wq1|Wk0|Wk1|Wv0|Wv1]
              [6,   0:6 ] = output_layer weight row (w_out)
              [7,   0:6 ] = [Wo0 @ w_out ; Wo1 @ w_out]   (folded output projection)
              [7,   6   ] = output_layer bias
    out_ref : (1, 2) f32 -- [z, logsigmoid(z)] for this word.
    """
    b = pl.program_id(0)
    L = ids_ref.shape[1]

    row = lax.broadcasted_iota(jnp.int32, (L, D_MODEL), 0)
    col = lax.broadcasted_iota(jnp.int32, (L, D_MODEL), 1)

    # x = eye(3, d_model)[w] + PositionEncodingFirstExact(len(w))  (flag at row 1, dim 3)
    # TODO(synk): for a degenerate L == 1 (CLS-only) word the position-1 flag is vacuously absent.
    x = jnp.logical_and(row == 1, col == 3).astype(jnp.float32)
    for i in range(L):                            # static unroll; L is small
        s = ids_ref[b, i]                         # scalar SMEM read, no DMA
        x = x + jnp.logical_and(row == i, col == s).astype(jnp.float32)

    # Fused QKV projection for both heads: single (L, 6) x (6, 18) MXU matmul.
    wqkv = wpk_ref[0:D_MODEL, 0:3 * N_HEADS * HEAD_DIM]
    proj = jnp.dot(x, wqkv, preferred_element_type=jnp.float32)        # (L, 18)

    q_cls = proj[0:1, 0:2 * HEAD_DIM]             # only the CLS row's queries are needed
    k_all = proj[:, 2 * HEAD_DIM:4 * HEAD_DIM]    # (L, 6)
    v_all = proj[:, 4 * HEAD_DIM:6 * HEAD_DIM]    # (L, 6)

    # Per-head CLS-row attention scores on the VPU (no more tiny MXU dots).
    kq = k_all * q_cls                                                  # (L, 6)
    s0 = jnp.sum(kq[:, 0:HEAD_DIM], axis=1, keepdims=True)             # (L, 1)
    s1 = jnp.sum(kq[:, HEAD_DIM:2 * HEAD_DIM], axis=1, keepdims=True)  # (L, 1)

    # Softmax over keys; |logits| <= ATTN_SHARPNESS so max-subtraction is unnecessary in f32.
    p0 = jnp.exp(s0)
    p1 = jnp.exp(s1)
    p0 = p0 * pl.reciprocal(jnp.sum(p0, axis=0, keepdims=True), approx=True)
    p1 = p1 * pl.reciprocal(jnp.sum(p1, axis=0, keepdims=True), approx=True)

    # Weighted value sums for the CLS row only.
    o0 = jnp.sum(p0 * v_all[:, 0:HEAD_DIM], axis=0, keepdims=True)             # (1, 3)
    o1 = jnp.sum(p1 * v_all[:, HEAD_DIM:2 * HEAD_DIM], axis=0, keepdims=True)  # (1, 3)

    # z = y[0] @ w_out + b = x[0] @ w_out + o0 @ (Wo0 @ w_out) + o1 @ (Wo1 @ w_out) + b
    w_out_row = wpk_ref[6:7, 0:D_MODEL]                    # (1, 6)
    wo0_row = wpk_ref[7:8, 0:HEAD_DIM]                     # (1, 3)
    wo1_row = wpk_ref[7:8, HEAD_DIM:2 * HEAD_DIM]          # (1, 3)
    bias = wpk_ref[7:8, 6:7]                               # (1, 1)

    z = (jnp.sum(x[0:1, :] * w_out_row, axis=1, keepdims=True)
         + jnp.sum(o0 * wo0_row, axis=1, keepdims=True)
         + jnp.sum(o1 * wo1_row, axis=1, keepdims=True)
         + bias)                                           # (1, 1)

    # LogSigmoid (numerically stable)
    ls = jnp.where(z >= 0.0,
                   -jnp.log(1.0 + jnp.exp(-z)),
                   z - jnp.log(1.0 + jnp.exp(z)))

    out_ref[...] = jnp.concatenate([z, ls], axis=1)        # (1, 2): [z, logsigmoid(z)]


# --------------------------- parameters (deterministic) ----------------------
def _build_params():
    wq = jnp.zeros((N_HEADS, D_MODEL, HEAD_DIM), jnp.float32)
    wq = wq.at[0, 0:3, 0].set(ATTN_SHARPNESS)   # head 0 query: constant c (symbol one-hots sum to 1)
    wk = jnp.zeros((N_HEADS, D_MODEL, HEAD_DIM), jnp.float32)
    wk = wk.at[0, 3, 0].set(1.0)                # head 0 key: I[j == 1]  -> logit c at position 1
    wv = jnp.zeros((N_HEADS, D_MODEL, HEAD_DIM), jnp.float32)
    wv = wv.at[0, 1, 0].set(1.0)                # value: I[symbol == '1']
    wv = wv.at[1, 1, 0].set(1.0)
    wo = jnp.zeros((N_HEADS, HEAD_DIM, D_MODEL), jnp.float32)
    wo = wo.at[0, 0, 5].set(1.0)                # focused head adds into dim 5
    wo = wo.at[1, 0, 5].set(-1.0)               # uniform head subtracts from dim 5
    w_out = jnp.zeros((D_MODEL, 1), jnp.float32).at[5, 0].set(1.0)   # Linear weight [[0,0,0,0,0,1]]
    b_out = jnp.zeros((1,), jnp.float32)                             # Linear bias [0.]
    # TODO(synk): the unused parent-class nn.Embedding(alphabet_size, d_model) is not materialized.
    return wq, wk, wv, wo, w_out, b_out


def _pack_params(wq, wk, wv, wo, w_out, b_out):
    """Collapse all weights into a single (8, 32) f32 VMEM tile (one DMA, fetched once)."""
    wqkv = jnp.concatenate([wq[0], wq[1], wk[0], wk[1], wv[0], wv[1]], axis=1)   # (6, 18)
    wo_out = jnp.concatenate([wo[0] @ w_out, wo[1] @ w_out], axis=0)             # (6, 1)
    packed = jnp.zeros((8, 32), jnp.float32)
    packed = packed.at[0:D_MODEL, 0:3 * N_HEADS * HEAD_DIM].set(wqkv)
    packed = packed.at[6, 0:D_MODEL].set(w_out[:, 0])
    packed = packed.at[7, 0:D_MODEL].set(wo_out[:, 0])
    packed = packed.at[7, D_MODEL].set(b_out[0])
    return packed


# ------------------------------- wrapper --------------------------------------
@jax.jit
def _run_kernel(ids, w_packed):
    """ids: (B, L) int32 words (CLS prepended).  Returns (B, 1, 2) f32: [z, logsigmoid(z)]."""
    B, _ = ids.shape
    return pl.pallas_call(
        _first_exact_kernel,
        out_shape=jax.ShapeDtypeStruct((B, 1, 2), jnp.float32),
        grid_spec=pltpu.PrefetchScalarGridSpec(
            num_scalar_prefetch=1,                               # token ids -> SMEM, no per-step DMA
            grid=(B,),
            in_specs=[pl.BlockSpec((8, 32), lambda b, _ids: (0, 0))],   # weights resident in VMEM
            out_specs=pl.BlockSpec((None, 1, 2), lambda b, _ids: (b, 0, 0)),
        ),
        compiler_params=pltpu.CompilerParams(
            dimension_semantics=("parallel",)),                  # shard batch over TCs on v7x
    )(ids.astype(jnp.int32), w_packed)


def first_exact_transformer_forward(word_ids, w_packed):
    """Mirrors FirstExactTransformer.forward for one word: (bool membership, float logsigmoid(z))."""
    out = _run_kernel(jnp.asarray(word_ids, jnp.int32).reshape(1, -1), w_packed)
    jax.block_until_ready(out)
    z, ls = float(out[0, 0, 0]), float(out[0, 0, 1])
    return z > 0.0, ls


# --------------------------- pure-JAX reference --------------------------------
def _reference_forward(w_ids, wq, wk, wv, wo, w_out, b_out):
    L = w_ids.shape[0]
    x = jnp.eye(3, D_MODEL, dtype=jnp.float32)[w_ids]
    x = x + jnp.zeros((L, D_MODEL), jnp.float32).at[1, 3].set(1.0)
    attn = jnp.zeros((L, D_MODEL), jnp.float32)
    for h in range(N_HEADS):
        q, k, v = x @ wq[h], x @ wk[h], x @ wv[h]
        p = jax.nn.softmax(q @ k.T, axis=-1)
        attn = attn + (p @ v) @ wo[h]
    y = x + attn
    z = y[0] @ w_out + b_out
    return float(z[0]), float(jax.nn.log_sigmoid(z)[0])


# ----------------------------------- main --------------------------------------
if __name__ == "__main__":
    wq, wk, wv, wo, w_out, b_out = _build_params()
    w_packed = _pack_params(wq, wk, wv, wo, w_out, b_out)

    key = jax.random.PRNGKey(0)
    B, L = 8, 8                                   # 8 words, each: CLS + 7 binary symbols
    bits = jax.random.randint(key, (B, L - 1), 0, 2, dtype=jnp.int32)
    bits = bits.at[0, 0].set(1).at[1, 0].set(0)   # force one word in FIRST and one not
    ids = jnp.concatenate([jnp.full((B, 1), 2, jnp.int32), bits], axis=1)   # prepend CLS (id 2)

    out = _run_kernel(ids, w_packed)              # single batched pallas_call
    jax.block_until_ready(out)

    for b in range(B):
        z_ref, ls_ref = _reference_forward(ids[b], wq, wk, wv, wo, w_out, b_out)
        z, ls = float(out[b, 0, 0]), float(out[b, 0, 1])
        assert abs(z - z_ref) < 5e-3, (b, z, z_ref)
        assert abs(ls - ls_ref) < 5e-3, (b, ls, ls_ref)
        assert (z > 0.0) == (int(ids[b, 1]) == 1)     # exact recognition of FIRST

    accept, logprob = first_exact_transformer_forward(ids[0], w_packed)
    assert accept and logprob <= 0.0

    print("KERNEL_OK")
</pallas_src>

<mosaic_0001>
module attributes {stable_mosaic.version = 11 : i64} {
  func.func @_first_exact_kernel(%arg0: i32, %arg1: memref<8x8xi32, #tpu.memory_space<smem>>, %arg2: memref<8x32xf32, #tpu.memory_space<vmem>>, %arg3: memref<1x1x2xf32, #tpu.memory_space<vmem>>) attributes {dimension_semantics = [#tpu.dimension_semantics<parallel>], iteration_bounds = array<i64: 8>, scalar_prefetch = 1 : i64, scratch_operands = 0 : i64, tpu.core_type = #tpu.core_type<tc>, window_params = [{pipeline_mode = #tpu.pipeline_mode<synchronous>, transform_indices = @transform_0, window_bounds = array<i64: 8, 32>}, {transform_indices = @transform_1, window_bounds = array<i64: 1, 1, 2>}]} {
    %0 = tpu.iota {dimensions = array<i32: 0>} : vector<8x6xi32>
    %1 = tpu.iota {dimensions = array<i32: 1>} : vector<8x6xi32>
    %c1_i32 = arith.constant 1 : i32
    %2 = vector.broadcast %c1_i32 : i32 to vector<8x6xi32>
    %3 = arith.cmpi eq, %0, %2 : vector<8x6xi32>
    %c3_i32 = arith.constant 3 : i32
    %4 = vector.broadcast %c3_i32 : i32 to vector<8x6xi32>
    %5 = arith.cmpi eq, %1, %4 : vector<8x6xi32>
    %6 = arith.andi %3, %5 : vector<8x6xi1>
    %7 = arith.extui %6 : vector<8x6xi1> to vector<8x6xi32>
    %8 = arith.sitofp %7 : vector<8x6xi32> to vector<8x6xf32>
    %9 = arith.index_cast %arg0 : i32 to index
    %c0 = arith.constant 0 : index
    %10 = memref.load %arg1[%9, %c0] : memref<8x8xi32, #tpu.memory_space<smem>>
    %c0_i32 = arith.constant 0 : i32
    %11 = vector.broadcast %c0_i32 : i32 to vector<8x6xi32>
    %12 = arith.cmpi eq, %0, %11 : vector<8x6xi32>
    %13 = vector.broadcast %10 : i32 to vector<8x6xi32>
    %14 = arith.cmpi eq, %1, %13 : vector<8x6xi32>
    %15 = arith.andi %12, %14 : vector<8x6xi1>
    %16 = arith.extui %15 : vector<8x6xi1> to vector<8x6xi32>
    %17 = arith.sitofp %16 : vector<8x6xi32> to vector<8x6xf32>
    %18 = arith.addf %8, %17 : vector<8x6xf32>
    %19 = arith.index_cast %arg0 : i32 to index
    %c1 = arith.constant 1 : index
    %20 = memref.load %arg1[%19, %c1] : memref<8x8xi32, #tpu.memory_space<smem>>
    %c1_i32_0 = arith.constant 1 : i32
    %21 = vector.broadcast %c1_i32_0 : i32 to vector<8x6xi32>
    %22 = arith.cmpi eq, %0, %21 : vector<8x6xi32>
    %23 = vector.broadcast %20 : i32 to vector<8x6xi32>
    %24 = arith.cmpi eq, %1, %23 : vector<8x6xi32>
    %25 = arith.andi %22, %24 : vector<8x6xi1>
    %26 = arith.extui %25 : vector<8x6xi1> to vector<8x6xi32>
    %27 = arith.sitofp %26 : vector<8x6xi32> to vector<8x6xf32>
    %28 = arith.addf %18, %27 : vector<8x6xf32>
    %29 = arith.index_cast %arg0 : i32 to index
    %c2 = arith.constant 2 : index
    %30 = memref.load %arg1[%29, %c2] : memref<8x8xi32, #tpu.memory_space<smem>>
    %c2_i32 = arith.constant 2 : i32
    %31 = vector.broadcast %c2_i32 : i32 to vector<8x6xi32>
    %32 = arith.cmpi eq, %0, %31 : vector<8x6xi32>
    %33 = vector.broadcast %30 : i32 to vector<8x6xi32>
    %34 = arith.cmpi eq, %1, %33 : vector<8x6xi32>
    %35 = arith.andi %32, %34 : vector<8x6xi1>
    %36 = arith.extui %35 : vector<8x6xi1> to vector<8x6xi32>
    %37 = arith.sitofp %36 : vector<8x6xi32> to vector<8x6xf32>
    %38 = arith.addf %28, %37 : vector<8x6xf32>
    %39 = arith.index_cast %arg0 : i32 to index
    %c3 = arith.constant 3 : index
    %40 = memref.load %arg1[%39, %c3] : memref<8x8xi32, #tpu.memory_space<smem>>
    %c3_i32_1 = arith.constant 3 : i32
    %41 = vector.broadcast %c3_i32_1 : i32 to vector<8x6xi32>
    %42 = arith.cmpi eq, %0, %41 : vector<8x6xi32>
    %43 = vector.broadcast %40 : i32 to vector<8x6xi32>
    %44 = arith.cmpi eq, %1, %43 : vector<8x6xi32>
    %45 = arith.andi %42, %44 : vector<8x6xi1>
    %46 = arith.extui %45 : vector<8x6xi1> to vector<8x6xi32>
    %47 = arith.sitofp %46 : vector<8x6xi32> to vector<8x6xf32>
    %48 = arith.addf %38, %47 : vector<8x6xf32>
    %49 = arith.index_cast %arg0 : i32 to index
    %c4 = arith.constant 4 : index
    %50 = memref.load %arg1[%49, %c4] : memref<8x8xi32, #tpu.memory_space<smem>>
    %c4_i32 = arith.constant 4 : i32
    %51 = vector.broadcast %c4_i32 : i32 to vector<8x6xi32>
    %52 = arith.cmpi eq, %0, %51 : vector<8x6xi32>
    %53 = vector.broadcast %50 : i32 to vector<8x6xi32>
    %54 = arith.cmpi eq, %1, %53 : vector<8x6xi32>
    %55 = arith.andi %52, %54 : vector<8x6xi1>
    %56 = arith.extui %55 : vector<8x6xi1> to vector<8x6xi32>
    %57 = arith.sitofp %56 : vector<8x6xi32> to vector<8x6xf32>
    %58 = arith.addf %48, %57 : vector<8x6xf32>
    %59 = arith.index_cast %arg0 : i32 to index
    %c5 = arith.constant 5 : index
    %60 = memref.load %arg1[%59, %c5] : memref<8x8xi32, #tpu.memory_space<smem>>
    %c5_i32 = arith.constant 5 : i32
    %61 = vector.broadcast %c5_i32 : i32 to vector<8x6xi32>
    %62 = arith.cmpi eq, %0, %61 : vector<8x6xi32>
    %63 = vector.broadcast %60 : i32 to vector<8x6xi32>
    %64 = arith.cmpi eq, %1, %63 : vector<8x6xi32>
    %65 = arith.andi %62, %64 : vector<8x6xi1>
    %66 = arith.extui %65 : vector<8x6xi1> to vector<8x6xi32>
    %67 = arith.sitofp %66 : vector<8x6xi32> to vector<8x6xf32>
    %68 = arith.addf %58, %67 : vector<8x6xf32>
    %69 = arith.index_cast %arg0 : i32 to index
    %c6 = arith.constant 6 : index
    %70 = memref.load %arg1[%69, %c6] : memref<8x8xi32, #tpu.memory_space<smem>>
    %c6_i32 = arith.constant 6 : i32
    %71 = vector.broadcast %c6_i32 : i32 to vector<8x6xi32>
    %72 = arith.cmpi eq, %0, %71 : vector<8x6xi32>
    %73 = vector.broadcast %70 : i32 to vector<8x6xi32>
    %74 = arith.cmpi eq, %1, %73 : vector<8x6xi32>
    %75 = arith.andi %72, %74 : vector<8x6xi1>
    %76 = arith.extui %75 : vector<8x6xi1> to vector<8x6xi32>
    %77 = arith.sitofp %76 : vector<8x6xi32> to vector<8x6xf32>
    %78 = arith.addf %68, %77 : vector<8x6xf32>
    %79 = arith.index_cast %arg0 : i32 to index
    %c7 = arith.constant 7 : index
    %80 = memref.load %arg1[%79, %c7] : memref<8x8xi32, #tpu.memory_space<smem>>
    %c7_i32 = arith.constant 7 : i32
    %81 = vector.broadcast %c7_i32 : i32 to vector<8x6xi32>
    %82 = arith.cmpi eq, %0, %81 : vector<8x6xi32>
    %83 = vector.broadcast %80 : i32 to vector<8x6xi32>
    %84 = arith.cmpi eq, %1, %83 : vector<8x6xi32>
    %85 = arith.andi %82, %84 : vector<8x6xi1>
    %86 = arith.extui %85 : vector<8x6xi1> to vector<8x6xi32>
    %87 = arith.sitofp %86 : vector<8x6xi32> to vector<8x6xf32>
    %88 = arith.addf %78, %87 : vector<8x6xf32>
    %c0_2 = arith.constant 0 : index
    %c0_3 = arith.constant 0 : index
    %89 = vector.load %arg2[%c0_2, %c0_3] : memref<8x32xf32, #tpu.memory_space<vmem>>, vector<6x18xf32>
    %cst = arith.constant dense<0.000000e+00> : vector<8x18xf32>
    %90 = tpu.matmul %88, %89, %cst {dimension_numbers = #tpu.dot_dimension_numbers<[1], [0], [0], [1], [0, 0, 1, 1], [], []>} : vector<8x6xf32>, vector<6x18xf32>, vector<8x18xf32> -> vector<8x18xf32>
    %91 = vector.extract_strided_slice %90 {offsets = [0, 0], sizes = [1, 6], strides = [1, 1]} : vector<8x18xf32> to vector<1x6xf32>
    %92 = vector.extract_strided_slice %90 {offsets = [0, 6], sizes = [8, 6], strides = [1, 1]} : vector<8x18xf32> to vector<8x6xf32>
    %93 = vector.extract_strided_slice %90 {offsets = [0, 12], sizes = [8, 6], strides = [1, 1]} : vector<8x18xf32> to vector<8x6xf32>
    %94 = vector.broadcast %91 : vector<1x6xf32> to vector<8x6xf32>
    %95 = arith.mulf %92, %94 : vector<8x6xf32>
    %96 = vector.extract_strided_slice %95 {offsets = [0, 0], sizes = [8, 3], strides = [1, 1]} : vector<8x6xf32> to vector<8x3xf32>
    %cst_4 = arith.constant dense<0.000000e+00> : vector<8xf32>
    %97 = vector.multi_reduction <add>, %96, %cst_4 [1] : vector<8x3xf32> to vector<8xf32>
    %98 = vector.shape_cast %97 : vector<8xf32> to vector<8x1xf32>
    %99 = vector.extract_strided_slice %95 {offsets = [0, 3], sizes = [8, 3], strides = [1, 1]} : vector<8x6xf32> to vector<8x3xf32>
    %cst_5 = arith.constant dense<0.000000e+00> : vector<8xf32>
    %100 = vector.multi_reduction <add>, %99, %cst_5 [1] : vector<8x3xf32> to vector<8xf32>
    %101 = vector.shape_cast %100 : vector<8xf32> to vector<8x1xf32>
    %102 = math.exp %98 : vector<8x1xf32>
    %103 = math.exp %101 : vector<8x1xf32>
    %cst_6 = arith.constant dense<0.000000e+00> : vector<1xf32>
    %104 = vector.multi_reduction <add>, %102, %cst_6 [0] : vector<8x1xf32> to vector<1xf32>
    %105 = vector.shape_cast %104 : vector<1xf32> to vector<1x1xf32>
    %106 = tpu.reciprocal %105 {approx = true} : vector<1x1xf32> -> vector<1x1xf32>
    %107 = vector.broadcast %106 : vector<1x1xf32> to vector<8x1xf32>
    %108 = arith.mulf %102, %107 : vector<8x1xf32>
    %cst_7 = arith.constant dense<0.000000e+00> : vector<1xf32>
    %109 = vector.multi_reduction <add>, %103, %cst_7 [0] : vector<8x1xf32> to vector<1xf32>
    %110 = vector.shape_cast %109 : vector<1xf32> to vector<1x1xf32>
    %111 = tpu.reciprocal %110 {approx = true} : vector<1x1xf32> -> vector<1x1xf32>
    %112 = vector.broadcast %111 : vector<1x1xf32> to vector<8x1xf32>
    %113 = arith.mulf %103, %112 : vector<8x1xf32>
    %114 = vector.extract_strided_slice %93 {offsets = [0, 0], sizes = [8, 3], strides = [1, 1]} : vector<8x6xf32> to vector<8x3xf32>
    %115 = vector.broadcast %108 : vector<8x1xf32> to vector<8x3xf32>
    %116 = arith.mulf %115, %114 : vector<8x3xf32>
    %cst_8 = arith.constant dense<0.000000e+00> : vector<3xf32>
    %117 = vector.multi_reduction <add>, %116, %cst_8 [0] : vector<8x3xf32> to vector<3xf32>
    %118 = vector.shape_cast %117 : vector<3xf32> to vector<1x3xf32>
    %119 = vector.extract_strided_slice %93 {offsets = [0, 3], sizes = [8, 3], strides = [1, 1]} : vector<8x6xf32> to vector<8x3xf32>
    %120 = vector.broadcast %113 : vector<8x1xf32> to vector<8x3xf32>
    %121 = arith.mulf %120, %119 : vector<8x3xf32>
    %cst_9 = arith.constant dense<0.000000e+00> : vector<3xf32>
    %122 = vector.multi_reduction <add>, %121, %cst_9 [0] : vector<8x3xf32> to vector<3xf32>
    %123 = vector.shape_cast %122 : vector<3xf32> to vector<1x3xf32>
    %c6_10 = arith.constant 6 : index
    %c0_11 = arith.constant 0 : index
    %124 = vector.load %arg2[%c6_10, %c0_11] : memref<8x32xf32, #tpu.memory_space<vmem>>, vector<1x6xf32>
    %c7_12 = arith.constant 7 : index
    %c0_13 = arith.constant 0 : index
    %125 = vector.load %arg2[%c7_12, %c0_13] : memref<8x32xf32, #tpu.memory_space<vmem>>, vector<1x3xf32>
    %c7_14 = arith.constant 7 : index
    %c3_15 = arith.constant 3 : index
    %126 = vector.load %arg2[%c7_14, %c3_15] : memref<8x32xf32, #tpu.memory_space<vmem>>, vector<1x3xf32>
    %c7_16 = arith.constant 7 : index
    %c6_17 = arith.constant 6 : index
    %127 = vector.load %arg2[%c7_16, %c6_17] : memref<8x32xf32, #tpu.memory_space<vmem>>, vector<1x1xf32>
    %128 = vector.extract_strided_slice %88 {offsets = [0, 0], sizes = [1, 6], strides = [1, 1]} : vector<8x6xf32> to vector<1x6xf32>
    %129 = arith.mulf %128, %124 : vector<1x6xf32>
    %cst_18 = arith.constant dense<0.000000e+00> : vector<1xf32>
    %130 = vector.multi_reduction <add>, %129, %cst_18 [1] : vector<1x6xf32> to vector<1xf32>
    %131 = vector.shape_cast %130 : vector<1xf32> to vector<1x1xf32>
    %132 = arith.mulf %118, %125 : vector<1x3xf32>
    %cst_19 = arith.constant dense<0.000000e+00> : vector<1xf32>
    %133 = vector.multi_reduction <add>, %132, %cst_19 [1] : vector<1x3xf32> to vector<1xf32>
    %134 = vector.shape_cast %133 : vector<1xf32> to vector<1x1xf32>
    %135 = arith.addf %131, %134 : vector<1x1xf32>
    %136 = arith.mulf %123, %126 : vector<1x3xf32>
    %cst_20 = arith.constant dense<0.000000e+00> : vector<1xf32>
    %137 = vector.multi_reduction <add>, %136, %cst_20 [1] : vector<1x3xf32> to vector<1xf32>
    %138 = vector.shape_cast %137 : vector<1xf32> to vector<1x1xf32>
    %139 = arith.addf %135, %138 : vector<1x1xf32>
    %140 = arith.addf %139, %127 : vector<1x1xf32>
    %cst_21 = arith.constant 0.000000e+00 : f32
    %141 = vector.broadcast %cst_21 : f32 to vector<1x1xf32>
    %142 = arith.cmpf oge, %140, %141 : vector<1x1xf32>
    %cst_22 = arith.constant 0.000000e+00 : f32
    %143 = vector.broadcast %cst_22 : f32 to vector<1x1xf32>
    %144 = arith.subf %143, %140 : vector<1x1xf32>
    %145 = math.exp %144 : vector<1x1xf32>
    %cst_23 = arith.constant 1.000000e+00 : f32
    %146 = vector.broadcast %cst_23 : f32 to vector<1x1xf32>
    %147 = arith.addf %146, %145 : vector<1x1xf32>
    %148 = math.log %147 : vector<1x1xf32>
    %cst_24 = arith.constant 0.000000e+00 : f32
    %149 = vector.broadcast %cst_24 : f32 to vector<1x1xf32>
    %150 = arith.subf %149, %148 : vector<1x1xf32>
    %151 = math.exp %140 : vector<1x1xf32>
    %cst_25 = arith.constant 1.000000e+00 : f32
    %152 = vector.broadcast %cst_25 : f32 to vector<1x1xf32>
    %153 = arith.addf %152, %151 : vector<1x1xf32>
    %154 = math.log %153 : vector<1x1xf32>
    %155 = arith.subf %140, %154 : vector<1x1xf32>
    %156 = arith.select %142, %150, %155 : vector<1x1xi1>, vector<1x1xf32>
    %157 = tpu.concatenate %140, %156 in 1 : vector<1x1xf32>, vector<1x1xf32> -> vector<1x2xf32>
    %c0_26 = arith.constant 0 : index
    %c0_27 = arith.constant 0 : index
    %c0_28 = arith.constant 0 : index
    %158 = vector.load %arg3[%c0_26, %c0_27, %c0_28] : memref<1x1x2xf32, #tpu.memory_space<vmem>>, vector<1x1x2xf32>
    %159 = vector.shape_cast %158 : vector<1x1x2xf32> to vector<1x2xf32>
    %160 = vector.shape_cast %157 : vector<1x2xf32> to vector<1x1x2xf32>
    tpu.vector_store %arg3[%c0_26, %c0_27, %c0_28], %160 {strides = array<i32>} : memref<1x1x2xf32, #tpu.memory_space<vmem>>, vector<1x1x2xf32>,
    return
  }
  func.func @transform_0(%arg0: i32, %arg1: memref<8x8xi32, #tpu.memory_space<smem>>) -> (i32, i32) {
    %c0_i32 = arith.constant 0 : i32
    %c0_i32_0 = arith.constant 0 : i32
    %c0_i32_1 = arith.constant 0 : i32
    return %c0_i32, %c0_i32_0 : i32, i32
  }
  func.func @transform_1(%arg0: i32, %arg1: memref<8x8xi32, #tpu.memory_space<smem>>) -> (i32, i32, i32) {
    %c0_i32 = arith.constant 0 : i32
    %c0_i32_0 = arith.constant 0 : i32
    %c0_i32_1 = arith.constant 0 : i32
    return %arg0, %c0_i32, %c0_i32_0 : i32, i32, i32
  }
}

</mosaic_0001>

<bundles_post_ra>
// kernel: _run_kernel.1
= control target key start
LH: loop header
LB: loop body
LE: loop exit
PB: predicated region body
PF: predicated region fallthrough
CT: control target
= control target key end

     0   :  { %s556_s9 = smov [#allocation3]   ;;  %s679_s0 = inlined_call_operand.hbm [shape: s32[8,8], index: 0, kind: input, shape index: {}]   ;;  %s680_s1 = inlined_call_operand.hbm [shape: f32[8,32], index: 1, kind: input, shape index: {}]   ;;  %s681_s2 = inlined_call_operand.vmem [shape: f32[8,1,2], index: 2, kind: output, shape index: {}]  }
   0x1   :  { %8 = dma.hbm_to_smem %s679_s0, 128, %s556_s9, [#allocation2] }
   0x2   :  { %546 = dma.done.wait [#allocation2], 128 }
   0x3   :  { %547 = vsyncadd [#allocation2], 4294967168 }
   0x4   :  { %10 = sfence }
   0x5   :  { %11 = vsyncpa [#allocation5], 0  ;;  %s585_s12 = smov 0  }
   0x6 LB: > { %s591_s13 = sadd.s32 4294967295, %s554_s12   ;;  %p438_p0 = scmp.ge.s32.totalorder %s554_s12, 1  ;;  %s554_s12 = sphi %s585_s12, %s17_s12  }
   0x7   : > { %p69_p1 = scmp.lt.s32.totalorder %s554_s12, 9  ;;  %p471_p3 = scmp.eq.s32.totalorder %s591_s13, 0 }
   0x8   : > { %s557_s14 = smov [#allocation4]  }
   0x9   : > { %p595_p2 = pnand %p438_p0, %p69_p1  ;;  %s82_s15 = sshll.u32 %s557_s14, 4  ;;  %s83_s15 = int_to_ptr.vmem [resolvable:$true] %s82_s15 }
   0xa   : > { %s527_s16 = scalar_lea.vmem %s83_s15, 128  ;;  %p535_p10 = scmp.lt.s32.totalorder %s83_s15, %s83_s15 }
   0xb   : > { %p467_p4 = pneg %p595_p2  ;;  %p528_p7 = scmp.ne.s32.totalorder %s83_s15, %s527_s16 }
   0xc   : > { %p536_p11 = scmp.lt.s32.totalorder %s527_s16, %s527_s16 }
   0xd   : > { %p468_p5 = pnand %p471_p3, %p467_p4 }
   0xe   : > { %p537_p12 = por %p536_p11, %p535_p10 }
   0xf   : > { %p518_p6 = pneg %p468_p5 }
  0x11   : > { %p530_p8 = pnand %p528_p7, %p518_p6 }
  0x13   : > { %p531_p9 = pneg %p530_p8 }
  0x15   : > { %p538_p13 = pnand %p537_p12, %p531_p9 }
  0x17   : > { %541 = shalt.err (!%p538_p13)
}
  0x18   : > { %470 = dma.hbm_to_vmem [thread:$0]  (!%p468_p5), %s680_s1, 128, %s83_s15, [#allocation5]  }
  0x19   : > { %95 = sbr.rel (%p595_p2) target bundleno = 1103 (0x44f), region = 24 }
  0x1e   : > { %549 = dma.done.wait (%p471_p3), [#allocation5], 128  }
  0x1f   : > { %551 = vsyncadd (%p471_p3), [#allocation5], 4294967168  ;;  %v111_v0 = vlaneseq  ;;  %s614_s19 = sshll.u32 %s591_s13, 7  ;;  %v558_v1 = vmov 0.0   ;;  %vm559_vm0 = vmmov 0   ;;  %vm196_vm3 = vcmask 1045504  }
  0x20   : > { %458 = vmatprep.subr.mxu0 %v558_v1  ;;  %460 = vmatprep.mubr.msk.f32.mxu0 %vm559_vm0, %v558_v1  ;;  %s121_s20 = sld [smem:[#allocation3 + %s614_s19]]  ;;  %s129_s21 = sadd.s32 1, %s614_s19  ;;  %v191_v4 = vld [vmem:[#allocation4] sm:$0x3f]  ;;  %v666_v40 = vld [vmem:[#allocation4 + $0x7] sm:$0x1] }
  0x21   : > { %v620_v2 = vshrl.u32 %v111_v0, 7  ;;  %v114_v3 = vand.u32 127, %v111_v0  ;;  %s130_s22 = sld [smem:[#allocation3 + %s129_s21]]  ;;  %s137_s23 = sadd.s32 2, %s614_s19  ;;  %459 = vmatpush3.msk.msra.mxu0 %vm196_vm3, %v191_v4 }
  0x22   : > { %s138_s24 = sld [smem:[#allocation3 + %s137_s23]]  ;;  %s146_s25 = sadd.s32 3, %s614_s19 }
  0x23   : > { %vm115_vm1 = vcmp.eq.s32.totalorder %v620_v2, 1  ;;  %vm116_vm2 = vcmp.eq.s32.totalorder %v114_v3, 3  ;;  %s625_s26 = sld [smem:[#allocation3 + %s146_s25]]  ;;  %s155_s27 = sadd.s32 4, %s614_s19  ;;  %vm122_vm5 = vcmp.eq.s32.totalorder %v620_v2, 0  ;;  %vm139_vm7 = vcmp.eq.s32.totalorder %v620_v2, 2 }
  0x24   : > { %vm117_vm4 = vmand %vm115_vm1, %vm116_vm2  ;;  %s630_s28 = sld [smem:[#allocation3 + %s155_s27]]  ;;  %s164_s29 = sadd.s32 5, %s614_s19  ;;  %vm148_vm10 = vcmp.eq.s32.totalorder %v620_v2, 3  ;;  %vm157_vm13 = vcmp.eq.s32.totalorder %v620_v2, 4  ;;  %vm166_vm3 = vcmp.eq.s32.totalorder %v620_v2, 5  ;;  %v272_v30 = vsub.s32 0, %v620_v2 }
  0x25   : > { %s634_s30 = sld [smem:[#allocation3 + %s164_s29]]  ;;  %s173_s3 = sadd.s32 6, %s614_s19  ;;  %v442_v6 = vsel %vm117_vm4, 1.0, %v558_v1 }
  0x26   : > { %v123_v5 = vstv %s121_s20  ;;  %s637_s4 = sld [smem:[#allocation3 + %s173_s3]]  ;;  %s182_s5 = sadd.s32 7, %s614_s19 }
  0x27   : > { %vm124_vm6 = vcmp.eq.s32.totalorder %v114_v3, %v123_v5  ;;  %v131_v7 = vstv %s130_s22  ;;  %s642_s6 = sld [smem:[#allocation3 + %s182_s5]]  ;;  %s560_s7 = smov 6  }
  0x28   : > { %vm125_vm8 = vmand %vm122_vm5, %vm124_vm6  ;;  %vm132_vm9 = vcmp.eq.s32.totalorder %v114_v3, %v131_v7  ;;  %v140_v8 = vstv %s138_s24  ;;  %vm175_vm5 = vcmp.eq.s32.totalorder %v620_v2, 6  ;;  %s561_s8 = smov 119   ;;  %s562_s9 = smov 122  }
  0x29   : > { %v444_v9 = vsel %vm125_vm8, 1.0, %v558_v1  ;;  %vm133_vm11 = vmand %vm115_vm1, %vm132_vm9  ;;  %vm141_vm12 = vcmp.eq.s32.totalorder %v114_v3, %v140_v8  ;;  %v149_v10 = vstv %s625_s26  ;;  %vm184_vm8 = vcmp.eq.s32.totalorder %v620_v2, 7  ;;  %s563_s10 = smov 12   ;;  %v331_v2 = vld [vmem:[#allocation4 + $0x6] sm:$0x1]  ;;  %s564_s11 = smov 116  }
  0x2a   : > { %v128_v11 = vadd.f32 %v444_v9, %v442_v6  ;;  %v445_v12 = vsel %vm133_vm11, 1.0, %v558_v1  ;;  %vm142_vm14 = vmand %vm139_vm7, %vm141_vm12  ;;  %vm150_vm15 = vcmp.eq.s32.totalorder %v114_v3, %v149_v10  ;;  %v158_v13 = vstv %s630_s28  ;;  %s565_s0 = smov 113   ;;  %s566_s14 = smov 123  }
  0x2b   : > { %v446_v14 = vsel %vm142_vm14, 1.0, %v558_v1  ;;  %vm151_vm0 = vmand %vm148_vm10, %vm150_vm15  ;;  %vm159_vm2 = vcmp.eq.s32.totalorder %v114_v3, %v158_v13  ;;  %v167_v15 = vstv %s634_s30  ;;  %vm192_vm12 = vcmask 48128   ;;  %p108_p0 = scmp.lt.s32.totalorder %s591_s13, 7 }
  0x2c   : > { %v136_v16 = vadd.f32 %v445_v12, %v128_v11  ;;  %vm160_vm1 = vmand %vm157_vm13, %vm159_vm2  ;;  %vm168_vm4 = vcmp.eq.s32.totalorder %v114_v3, %v167_v15  ;;  %v176_v17 = vstv %s637_s4  ;;  %v447_v18 = vsel %vm151_vm0, 1.0, %v558_v1 }
  0x2d   : > { %vm177_vm6 = vcmp.eq.s32.totalorder %v114_v3, %v176_v17  ;;  %v185_v19 = vstv %s642_s6  ;;  %vm169_vm7 = vmand %vm166_vm3, %vm168_vm4  ;;  %v448_v21 = vsel %vm160_vm1, 1.0, %v558_v1  ;;  %vm283_vm13 = vcmask 23552   ;;  %s684_s13 = smov (!%p108_p0, %s591_s13), 7 }
  0x2e   : > { %v145_v20 = vadd.f32 %v446_v14, %v136_v16  ;;  %vm186_vm9 = vcmp.eq.s32.totalorder %v114_v3, %v185_v19  ;;  %vm178_vm10 = vmand %vm175_vm5, %vm177_vm6  ;;  %v449_v23 = vsel %vm169_vm7, 1.0, %v558_v1  ;;  %vm314_vm14 = vcmask 121952   ;;  %s110_s17 = scalar_lea.vmem %s681_s2, %s684_s13 }
  0x2f   : > { %vm187_vm11 = vmand %vm184_vm8, %vm186_vm9  ;;  %v450_v25 = vsel %vm178_vm10, 1.0, %v558_v1  ;;  %vm323_vm15 = vcmask 146552   ;;  %vm334_vm0 = vcmask 40960   ;;  %vm347_vm2 = vcmask 16384  }
  0x30   : > { %v154_v22 = vadd.f32 %v447_v18, %v145_v20  ;;  %v451_v27 = vsel %vm187_vm11, 1.0, %v558_v1  ;;  %vm385_vm1 = vcmask 7168   ;;  %vm387_vm4 = vcmask 8192  }
  0x32   : > { %v163_v24 = vadd.f32 %v448_v21, %v154_v22 }
  0x34   : > { %v172_v26 = vadd.f32 %v449_v23, %v163_v24 }
  0x36   : > { %v181_v28 = vadd.f32 %v450_v25, %v172_v26 }
  0x38   : > { %v190_v29 = vadd.f32 %v451_v27, %v181_v28 }
  0x3a   : > { %461 = vmatmul.mubr.msk.f32.vlgmr.msra.gmra.mxu0 %vm192_vm12, %v190_v29  ;;  %v333_v5 = vmul.f32 %v331_v2, %v190_v29 }
  0x3c   : > { %v335_v8 = vsel %vm334_vm0, %v333_v5, 0.0 }
  0xfa   : > { %v266_v31 = vpop.f32.mrf.mxu0 }
  0xfb   : > { %v273_v32 = vrot.slane %v266_v31, %v272_v30 }
  0xfc   : > { %v462_v33 = vpop.f32.mrf.mxu0 }
  0xfd   : > { %275 = vrot.lane.b32.xlu0 %v273_v32, %s560_s7 }
 0x16f   : > { %v276_v34 = vpop.permute.xlu0 %275 }
 0x170   : > { %v278_v35 = vmul.f32 %v276_v34, %v266_v31 }
 0x172   : > { %287 = vrot.lane.b32.xlu1 %v278_v35, %s561_s8  ;;  %280 = vrot.lane.b32.xlu0 %v278_v35, %s562_s9 }
 0x1e4   : > { %v288_v36 = vpop.permute.xlu1 %287  ;;  %v281_v37 = vpop.permute.xlu0 %280 }
 0x1e5   : > { %v290_v38 = vsel %vm283_vm13, %v288_v36, 0.0  ;;  %v284_v39 = vsel %vm283_vm13, %v281_v37, 0.0 }
 0x1e6   : > { %291 = vadd.xlane.f32.xlu0 %v290_v38  ;;  %285 = vadd.xlane.f32.xlu1 %v284_v39 }
 0x1fc   : > { %339 = vrot.lane.b32.xlu0 %v666_v40, %s563_s10 }
 0x21b   : > { %336 = vadd.xlane.f32.xlu0 %v335_v8 }
 0x26f   : > { %v286_v41 = vpop.xlane.xlu1 %285  ;;  %v292_v42 = vpop.xlane.xlu0 %291 }
 0x270   : > { %v293_v43 = vmul.f32 1.442695, %v286_v41  ;;  %v295_v44 = vmul.f32 1.442695, %v292_v42 }
 0x272   : > { %492 = vpow2.f32 %v293_v43 }
 0x273   : > { %494 = vpow2.f32 %v295_v44  ;;  %v340_v16 = vpop.permute.xlu0 %339 }
 0x27f   : > { %v493_v45 = vpop.eup %492 }
 0x280   : > { %v495_v46 = vpop.eup %494  ;;  %v297_v47 = vrot.slane %v493_v45, 4 }
 0x281   : > { %v305_v48 = vrot.slane %v495_v46, 4 }
 0x282   : > { %v298_v49 = vadd.f32 %v493_v45, %v297_v47 }
 0x283   : > { %v306_v50 = vadd.f32 %v495_v46, %v305_v48 }
 0x284   : > { %v299_v51 = vrot.slane %v298_v49, 2 }
 0x285   : > { %v307_v52 = vrot.slane %v306_v50, 2 }
 0x286   : > { %v300_v53 = vadd.f32 %v299_v51, %v298_v49 }
 0x287   : > { %v308_v54 = vadd.f32 %v307_v52, %v306_v50 }
 0x288   : > { %v301_v55 = vrot.slane %v300_v53, 1 }
 0x289   : > { %v309_v56 = vrot.slane %v308_v54, 1 }
 0x28a   : > { %v302_v57 = vadd.f32 %v301_v55, %v300_v53 }
 0x28b   : > { %v310_v58 = vadd.f32 %v309_v56, %v308_v54 }
 0x28c   : > { %496 = vrcp.f32 %v302_v57 }
 0x28d   : > { %498 = vrcp.f32 %v310_v58 }
 0x299   : > { %v497_v59 = vpop.eup %496 }
 0x29a   : > { %v499_v60 = vpop.eup %498  ;;  %v304_v61 = vmul.f32 %v497_v59, %v493_v45 }
 0x29b   : > { %v312_v62 = vmul.f32 %v499_v60, %v495_v46 }
 0x29c   : > { %v313_v63 = vmul.f32 %v304_v61, %v266_v31 }
 0x29d   : > { %v322_v0 = vmul.f32 %v312_v62, %v266_v31 }
 0x29e   : > { %v315_v1 = vsel %vm314_vm14, %v313_v63, 0.0 }
 0x29f   : > { %v316_v3 = vrot.slane %v315_v1, 4  ;;  %v324_v4 = vsel %vm323_vm15, %v322_v0, 0.0 }
 0x2a0   : > { %v325_v6 = vrot.slane %v324_v4, 4 }
 0x2a1   : > { %v317_v7 = vadd.f32 %v316_v3, %v315_v1 }
 0x2a2   : > { %v326_v9 = vadd.f32 %v325_v6, %v324_v4 }
 0x2a3   : > { %v318_v10 = vrot.slane %v317_v7, 2 }
 0x2a4   : > { %v327_v11 = vrot.slane %v326_v9, 2  ;;  %v337_v25 = vpop.xlane.xlu0 %336 }
 0x2a5   : > { %v319_v12 = vadd.f32 %v318_v10, %v317_v7 }
 0x2a6   : > { %v328_v13 = vadd.f32 %v327_v11, %v326_v9 }
 0x2a7   : > { %v320_v14 = vrot.slane %v319_v12, 1 }
 0x2a8   : > { %v329_v15 = vrot.slane %v328_v13, 1 }
 0x2a9   : > { %v321_v17 = vadd.f32 %v320_v14, %v319_v12 }
 0x2aa   : > { %v330_v18 = vadd.f32 %v329_v15, %v328_v13 }
 0x2ab   : > { %v342_v19 = vmul.f32 %v340_v16, %v321_v17 }
 0x2ac   : > { %v352_v20 = vmul.f32 %v340_v16, %v330_v18 }
 0x2ad   : > { %344 = vrot.lane.b32.xlu1 %v342_v19, %s564_s11 }
 0x2b1   : > { %354 = vrot.lane.b32.xlu1 %v352_v20, %s565_s0 }
 0x31f   : > { %v345_v21 = vpop.permute.xlu1 %344 }
 0x320   : > { %v348_v22 = vsel %vm347_vm2, %v345_v21, 0.0 }
 0x321   : > { %349 = vadd.xlane.f32.xlu1 %v348_v22 }
 0x323   : > { %v355_v23 = vpop.permute.xlu1 %354 }
 0x324   : > { %v357_v24 = vsel %vm347_vm2, %v355_v23, 0.0 }
 0x325   : > { %358 = vadd.xlane.f32.xlu0 %v357_v24 }
 0x3aa   : > { %v350_v26 = vpop.xlane.xlu1 %349 }
 0x3ab   : > { %v351_v27 = vadd.f32 %v350_v26, %v337_v25 }
 0x3ae   : > { %v359_v28 = vpop.xlane.xlu0 %358 }
 0x3af   : > { %v360_v29 = vadd.f32 %v359_v28, %v351_v27 }
 0x3b1   : > { %v361_v30 = vadd.f32 %v360_v29, %v666_v40 }
 0x3b3   : > { %v363_v31 = vsub.f32 0.0, %v361_v30  ;;  %v370_v32 = vmul.f32 1.442695, %v361_v30  ;;  %378 = vrot.lane.b32.xlu0 %v361_v30, %s562_s9  ;;  %vm362_vm3 = vcmp.ge.f32.partialorder %v361_v30, 0.0 }
 0x3b5   : > { %500 = vpow2.f32 %v370_v32  ;;  %v364_v33 = vmul.f32 1.442695, %v363_v31 }
 0x3b7   : > { %502 = vpow2.f32 %v364_v33 }
 0x3c2   : > { %v501_v34 = vpop.eup %500 }
 0x3c3   : > { %v372_v35 = vadd.f32 1.0, %v501_v34 }
 0x3c4   : > { %v503_v36 = vpop.eup %502 }
 0x3c5   : > { %v366_v37 = vadd.f32 1.0, %v503_v36  ;;  %504 = vlog2.f32 %v372_v35 }
 0x3c7   : > { %506 = vlog2.f32 %v366_v37 }
 0x3d2   : > { %v505_v38 = vpop.eup %504 }
 0x3d3   : > { %v374_v39 = vmul.f32 0.6931472, %v505_v38 }
 0x3d4   : > { %v507_v41 = vpop.eup %506 }
 0x3d5   : > { %v368_v42 = vmul.f32 0.6931472, %v507_v41  ;;  %v375_v43 = vsub.f32 %v361_v30, %v374_v39 }
 0x3d7   : > { %v369_v40 = vsub.f32 0.0, %v368_v42 }
 0x3d9   : > { %v376_v44 = vsel %vm362_vm3, %v369_v40, %v375_v43 }
 0x3da   : > { %382 = vrot.lane.b32.xlu1 %v376_v44, %s566_s14 }
 0x425   : > { %v379_v45 = vpop.permute.xlu0 %378 }
 0x44c   : > { %v383_v46 = vpop.permute.xlu1 %382 }
 0x44d   : > { %v386_v47 = vsel %vm385_vm1, %v379_v45, %v383_v46 }
 0x44e   : > { %388 = vst.msk [vmem:[%s110_s17] sm:$0x1] %vm387_vm4, %v386_v47 }
 0x44f PF: > { %s17_s12 = sadd.s32 1, %s554_s12  }
 0x450   : > { %p14_p1 = scmp.ge.s32.totalorder %s17_s12, 10  }
 0x452   :  { %16 = sbr.rel (!%p14_p1) target bundleno = 6 (0x6), region = 56 }
 0x457   :  { %406 = vsyncpa [#allocation5], 1 }
 0x458   :  { %408 = vsyncpa [#allocation5 + $0x1], 1 }

</bundles_post_ra>
